<compile_context>
chip_gen: v7x
topology: tpu7x:2x2x1
jax: 0.10.0
libtpu: 0.0.40
codegen_flags: <defaults>
</compile_context>

<pallas_src>
import numpy as np
import jax
import jax.numpy as jnp
from jax import lax
from jax.experimental import pallas as pl
from jax.experimental.pallas import tpu as pltpu

_LANE = 128
_SUB = 8


def _elementwise_terms(x, t):
    """Per-element BCE-with-logits term and stable sigmoid, in f32, one shared exp."""
    x = x.astype(jnp.float32)
    t = t.astype(jnp.float32)
    e = jnp.exp(-jnp.abs(x))                       # shared by BCE log term and sigmoid
    one_pe = 1.0 + e
    bce = jnp.maximum(x, 0.0) - x * t + jnp.log(one_pe)
    inv = pl.reciprocal(one_pe, approx=True)       # EUP slot, ~free
    p = jnp.where(x >= 0.0, inv, e * inv)          # numerically stable sigmoid(x)
    return bce, p, t


def _make_rows_kernel(n, tile_rows, r_valid, blocks_per_split, num_full_blocks, needs_mask):
    """Fast path: tiles are (n, tile_rows, 128); accumulators are (1, n, 8, 128)."""
    rg = tile_rows // _SUB

    def fold(v):  # (n, tile_rows, 128) -> (n, 8, 128); reshape is layout-preserving (free)
        return jnp.sum(v.reshape(n, rg, _SUB, _LANE), axis=1)

    def kernel(x_ref, t_ref, bce_ref, inter_ref, p_ref, tsum_ref):
        s = pl.program_id(0)
        k = pl.program_id(1)
        block_idx = s * blocks_per_split + k

        @pl.when(k == 0)
        def _init():
            bce_ref[...] = jnp.zeros_like(bce_ref)
            inter_ref[...] = jnp.zeros_like(inter_ref)
            p_ref[...] = jnp.zeros_like(p_ref)
            tsum_ref[...] = jnp.zeros_like(tsum_ref)

        def accumulate(mask):
            bce, p, t = _elementwise_terms(x_ref[...], t_ref[...])
            pt = p * t
            if mask is not None:
                bce = jnp.where(mask, bce, 0.0)
                pt = jnp.where(mask, pt, 0.0)
                p = jnp.where(mask, p, 0.0)
                t = jnp.where(mask, t, 0.0)
            bce_ref[...] += fold(bce)[None]
            inter_ref[...] += fold(pt)[None]
            p_ref[...] += fold(p)[None]
            tsum_ref[...] += fold(t)[None]

        if needs_mask:
            @pl.when(block_idx < num_full_blocks)
            def _full():
                accumulate(None)

            @pl.when(block_idx >= num_full_blocks)
            def _tail():
                row = lax.broadcasted_iota(jnp.int32, (tile_rows, _LANE), 0)
                mask = (block_idx * tile_rows + row) < r_valid
                accumulate(mask[None, :, :])
        else:
            accumulate(None)

    return kernel


def _make_flat_kernel(n, tile_w, d_valid, blocks_per_split, num_full_blocks, needs_mask):
    """Ragged-D path: tiles are (n, tile_w); accumulators are (1, n, 1)."""

    def kernel(x_ref, t_ref, bce_ref, inter_ref, p_ref, tsum_ref):
        s = pl.program_id(0)
        k = pl.program_id(1)
        block_idx = s * blocks_per_split + k

        @pl.when(k == 0)
        def _init():
            bce_ref[...] = jnp.zeros_like(bce_ref)
            inter_ref[...] = jnp.zeros_like(inter_ref)
            p_ref[...] = jnp.zeros_like(p_ref)
            tsum_ref[...] = jnp.zeros_like(tsum_ref)

        def accumulate(mask):
            bce, p, t = _elementwise_terms(x_ref[...], t_ref[...])
            pt = p * t
            if mask is not None:
                bce = jnp.where(mask, bce, 0.0)
                pt = jnp.where(mask, pt, 0.0)
                p = jnp.where(mask, p, 0.0)
                t = jnp.where(mask, t, 0.0)
            bce_ref[...] += jnp.sum(bce, axis=-1, keepdims=True)[None]
            inter_ref[...] += jnp.sum(pt, axis=-1, keepdims=True)[None]
            p_ref[...] += jnp.sum(p, axis=-1, keepdims=True)[None]
            tsum_ref[...] += jnp.sum(t, axis=-1, keepdims=True)[None]

        if needs_mask:
            @pl.when(block_idx < num_full_blocks)
            def _full():
                accumulate(None)

            @pl.when(block_idx >= num_full_blocks)
            def _tail():
                col = lax.broadcasted_iota(jnp.int32, (n, tile_w), 1)
                mask = (block_idx * tile_w + col) < d_valid
                accumulate(mask)
        else:
            accumulate(None)

    return kernel


def bce_dice_loss(logits, target):
    """logits, target: [N, C, H, W] (any float dtype). Returns scalar f32 loss."""
    n = logits.shape[0]
    d = int(np.prod(logits.shape[1:]))
    x = logits.reshape(n, d)        # dtype preserved: bf16 inputs stream as bf16
    t = target.reshape(n, d)
    item_bytes = x.dtype.itemsize + t.dtype.itemsize

    # Combined (x + t) bytes per pipeline buffer; 2 buffers when double-buffered.
    buf_budget = 12 * 1024 * 1024

    if d % _LANE == 0:
        # Fast path: free reshape to a lane-dense (N, R, 128) view (full vreg use for tiny N).
        r = d // _LANE
        x_in = x.reshape(n, r, _LANE)
        t_in = t.reshape(n, r, _LANE)

        row_bytes = n * _LANE * item_bytes
        tile_rows = (buf_budget // row_bytes) // _SUB * _SUB
        tile_rows = int(max(_SUB, min(tile_rows, 4096, pl.cdiv(r, _SUB) * _SUB)))
        # TODO(synk): for very large N (N*8*128*bytes per buffer > budget) add an N-blocking
        # grid axis; the floor tile can otherwise exceed the VMEM budget (fatal first on v7x).

        num_blocks = pl.cdiv(r, tile_rows)
        splits = 2 if num_blocks >= 2 else 1          # one split per v7x TensorCore
        bps = pl.cdiv(num_blocks, splits)             # blocks (grid steps) per split
        num_full_blocks = r // tile_rows
        needs_mask = (splits * bps) != num_full_blocks

        kernel = _make_rows_kernel(n, tile_rows, r, bps, num_full_blocks, needs_mask)

        def in_idx(s, k):
            b = s * bps + k
            if splits * bps > num_blocks:             # keep DMA origins in-bounds
                b = jnp.minimum(b, num_blocks - 1)
            return (0, b, 0)

        in_specs = [pl.BlockSpec((n, tile_rows, _LANE), in_idx),
                    pl.BlockSpec((n, tile_rows, _LANE), in_idx)]
        acc_shape = (splits, n, _SUB, _LANE)
        out_specs = [pl.BlockSpec((1, n, _SUB, _LANE), lambda s, k: (s, 0, 0, 0))] * 4
        in_args = (x_in, t_in)
        tile_in_bytes = n * tile_rows * _LANE * item_bytes
    else:
        # Ragged-D path: keep the natural (N, D) layout (no jnp.pad HBM pass),
        # mask the ragged tail in-kernel against D.
        n_sub = pl.cdiv(n, _SUB) * _SUB               # VMEM sublane padding for small N
        col_bytes = n_sub * item_bytes
        tile_w = (buf_budget // col_bytes) // _LANE * _LANE
        tile_w = int(max(_LANE, min(tile_w, pl.cdiv(d, _LANE) * _LANE)))

        num_blocks = pl.cdiv(d, tile_w)
        splits = 2 if num_blocks >= 2 else 1
        bps = pl.cdiv(num_blocks, splits)
        num_full_blocks = d // tile_w
        needs_mask = (splits * bps) != num_full_blocks

        kernel = _make_flat_kernel(n, tile_w, d, bps, num_full_blocks, needs_mask)

        def in_idx(s, k):
            b = s * bps + k
            if splits * bps > num_blocks:
                b = jnp.minimum(b, num_blocks - 1)
            return (0, b)

        in_specs = [pl.BlockSpec((n, tile_w), in_idx),
                    pl.BlockSpec((n, tile_w), in_idx)]
        acc_shape = (splits, n, 1)
        out_specs = [pl.BlockSpec((1, n, 1), lambda s, k: (s, 0, 0))] * 4
        in_args = (x, t)
        tile_in_bytes = n_sub * tile_w * item_bytes

    acc_bytes = 4 * int(np.prod(acc_shape)) * 4
    vmem_limit = int(2 * tile_in_bytes + 2 * acc_bytes + (8 << 20))   # buffers + accs + headroom

    out_shapes = tuple(jax.ShapeDtypeStruct(acc_shape, jnp.float32) for _ in range(4))

    bce_parts, inter_parts, p_parts, t_parts = pl.pallas_call(
        kernel,
        out_shape=out_shapes,
        grid_spec=pltpu.PrefetchScalarGridSpec(
            num_scalar_prefetch=0,
            grid=(splits, bps),
            in_specs=in_specs,
            out_specs=out_specs,
        ),
        compiler_params=pltpu.CompilerParams(
            dimension_semantics=("parallel", "arbitrary"),
            vmem_limit_bytes=vmem_limit,
        ),
    )(*in_args)

    # Tiny epilogue on the (splits, N, ...) partial sums (negligible XLA work).
    def _sum_keep_sample(a):
        return jnp.sum(a, axis=tuple(i for i in range(a.ndim) if i != 1))

    bce_mean = jnp.sum(bce_parts) / float(n * d)
    inter = _sum_keep_sample(inter_parts)
    sum_p = _sum_keep_sample(p_parts)
    sum_t = _sum_keep_sample(t_parts)
    scores = 2.0 * (inter + 1.0) / (sum_p + sum_t + 1.0)
    score = jnp.clip(jnp.sum(scores) / float(n), 0.0, 1.0)
    return bce_mean + 1.0 - score


def _reference(logits, target):
    # Pure-JAX reference of the PyTorch semantics (exact sigmoid / divisions).
    n = logits.shape[0]
    x = logits.reshape(n, -1).astype(jnp.float32)
    t = target.reshape(n, -1).astype(jnp.float32)
    bce = jnp.mean(jnp.maximum(x, 0.0) - x * t + jnp.log1p(jnp.exp(-jnp.abs(x))))
    p = jax.nn.sigmoid(x)
    scores = 2.0 * (jnp.sum(p * t, axis=1) + 1.0) / (jnp.sum(p, axis=1) + jnp.sum(t, axis=1) + 1.0)
    score = jnp.clip(jnp.sum(scores) / n, 0.0, 1.0)
    return bce + 1.0 - score


if __name__ == "__main__":
    key = jax.random.PRNGKey(0)
    k1, k2, k3, k4, k5, k6 = jax.random.split(key, 6)

    loss_fn = jax.jit(bce_dice_loss)

    # Case 1: D = C*H*W multiple of 128 (fast lane-dense path), f32 inputs.
    N, C, H, W = 2, 4, 16, 16
    logits = jax.random.normal(k1, (N, C, H, W), dtype=jnp.float32)
    target = jax.random.bernoulli(k2, p=0.5, shape=(N, C, H, W)).astype(jnp.float32)
    loss = loss_fn(logits, target)
    jax.block_until_ready(loss)
    ref = _reference(logits, target)
    # Loose-ish tolerance: the kernel uses the EUP approximate reciprocal for sigmoid.
    assert jnp.allclose(loss, ref, rtol=1e-2, atol=1e-2), (loss, ref)

    # Case 2: ragged D (3*15*15 = 675) — masked in-kernel, no jnp.pad HBM pass.
    N2, C2, H2, W2 = 2, 3, 15, 15
    logits2 = jax.random.normal(k3, (N2, C2, H2, W2), dtype=jnp.float32)
    target2 = jax.random.bernoulli(k4, p=0.5, shape=(N2, C2, H2, W2)).astype(jnp.float32)
    loss2 = loss_fn(logits2, target2)
    jax.block_until_ready(loss2)
    ref2 = _reference(logits2, target2)
    assert jnp.allclose(loss2, ref2, rtol=1e-2, atol=1e-2), (loss2, ref2)

    # Case 3: native bf16 inputs (halved HBM traffic; kernel upcasts to f32 internally).
    logits3 = jax.random.normal(k5, (N, C, H, W), dtype=jnp.bfloat16)
    target3 = jax.random.bernoulli(k6, p=0.5, shape=(N, C, H, W)).astype(jnp.bfloat16)
    loss3 = loss_fn(logits3, target3)
    jax.block_until_ready(loss3)
    ref3 = _reference(logits3, target3)
    assert jnp.allclose(loss3, ref3, rtol=1e-2, atol=1e-2), (loss3, ref3)

    print("KERNEL_OK")
</pallas_src>

<mosaic_0001>
module attributes {stable_mosaic.version = 11 : i64} {
  func.func @kernel(%arg0: i32, %arg1: i32, %arg2: memref<2x8x128xf32, #tpu.memory_space<vmem>>, %arg3: memref<2x8x128xf32, #tpu.memory_space<vmem>>, %arg4: memref<1x2x8x128xf32, #tpu.memory_space<vmem>>, %arg5: memref<1x2x8x128xf32, #tpu.memory_space<vmem>>, %arg6: memref<1x2x8x128xf32, #tpu.memory_space<vmem>>, %arg7: memref<1x2x8x128xf32, #tpu.memory_space<vmem>>) attributes {dimension_semantics = [#tpu.dimension_semantics<parallel>, #tpu.dimension_semantics<arbitrary>], iteration_bounds = array<i64: 1, 1>, scalar_prefetch = 0 : i64, scratch_operands = 0 : i64, tpu.core_type = #tpu.core_type<tc>, window_params = [{transform_indices = @transform_0, window_bounds = array<i64: 2, 8, 128>}, {transform_indices = @transform_1, window_bounds = array<i64: 2, 8, 128>}, {transform_indices = @transform_2, window_bounds = array<i64: 1, 2, 8, 128>}, {transform_indices = @transform_3, window_bounds = array<i64: 1, 2, 8, 128>}, {transform_indices = @transform_4, window_bounds = array<i64: 1, 2, 8, 128>}, {transform_indices = @transform_5, window_bounds = array<i64: 1, 2, 8, 128>}]} {
    %c0_i32 = arith.constant 0 : i32
    %0 = arith.cmpi eq, %arg1, %c0_i32 : i32
    %1 = arith.extui %0 : i1 to i32
    %c0_i32_0 = arith.constant 0 : i32
    %2 = arith.cmpi ne, %1, %c0_i32_0 : i32
    scf.if %2 {
      %cst_45 = arith.constant 0.000000e+00 : f32
      %47 = vector.broadcast %cst_45 : f32 to vector<1x2x8x128xf32>
      %c0_46 = arith.constant 0 : index
      %c0_47 = arith.constant 0 : index
      %c0_48 = arith.constant 0 : index
      %c0_49 = arith.constant 0 : index
      %48 = vector.load %arg4[%c0_46, %c0_47, %c0_48, %c0_49] : memref<1x2x8x128xf32, #tpu.memory_space<vmem>>, vector<1x2x8x128xf32>
      tpu.vector_store %arg4[%c0_46, %c0_47, %c0_48, %c0_49], %47 {strides = array<i32>} : memref<1x2x8x128xf32, #tpu.memory_space<vmem>>, vector<1x2x8x128xf32>,
      %cst_50 = arith.constant 0.000000e+00 : f32
      %49 = vector.broadcast %cst_50 : f32 to vector<1x2x8x128xf32>
      %c0_51 = arith.constant 0 : index
      %c0_52 = arith.constant 0 : index
      %c0_53 = arith.constant 0 : index
      %c0_54 = arith.constant 0 : index
      %50 = vector.load %arg5[%c0_51, %c0_52, %c0_53, %c0_54] : memref<1x2x8x128xf32, #tpu.memory_space<vmem>>, vector<1x2x8x128xf32>
      tpu.vector_store %arg5[%c0_51, %c0_52, %c0_53, %c0_54], %49 {strides = array<i32>} : memref<1x2x8x128xf32, #tpu.memory_space<vmem>>, vector<1x2x8x128xf32>,
      %cst_55 = arith.constant 0.000000e+00 : f32
      %51 = vector.broadcast %cst_55 : f32 to vector<1x2x8x128xf32>
      %c0_56 = arith.constant 0 : index
      %c0_57 = arith.constant 0 : index
      %c0_58 = arith.constant 0 : index
      %c0_59 = arith.constant 0 : index
      %52 = vector.load %arg6[%c0_56, %c0_57, %c0_58, %c0_59] : memref<1x2x8x128xf32, #tpu.memory_space<vmem>>, vector<1x2x8x128xf32>
      tpu.vector_store %arg6[%c0_56, %c0_57, %c0_58, %c0_59], %51 {strides = array<i32>} : memref<1x2x8x128xf32, #tpu.memory_space<vmem>>, vector<1x2x8x128xf32>,
      %cst_60 = arith.constant 0.000000e+00 : f32
      %53 = vector.broadcast %cst_60 : f32 to vector<1x2x8x128xf32>
      %c0_61 = arith.constant 0 : index
      %c0_62 = arith.constant 0 : index
      %c0_63 = arith.constant 0 : index
      %c0_64 = arith.constant 0 : index
      %54 = vector.load %arg7[%c0_61, %c0_62, %c0_63, %c0_64] : memref<1x2x8x128xf32, #tpu.memory_space<vmem>>, vector<1x2x8x128xf32>
      tpu.vector_store %arg7[%c0_61, %c0_62, %c0_63, %c0_64], %53 {strides = array<i32>} : memref<1x2x8x128xf32, #tpu.memory_space<vmem>>, vector<1x2x8x128xf32>,
    } else {
    }
    %c0 = arith.constant 0 : index
    %c0_1 = arith.constant 0 : index
    %c0_2 = arith.constant 0 : index
    %3 = vector.load %arg2[%c0, %c0_1, %c0_2] : memref<2x8x128xf32, #tpu.memory_space<vmem>>, vector<2x8x128xf32>
    %c0_3 = arith.constant 0 : index
    %c0_4 = arith.constant 0 : index
    %c0_5 = arith.constant 0 : index
    %4 = vector.load %arg3[%c0_3, %c0_4, %c0_5] : memref<2x8x128xf32, #tpu.memory_space<vmem>>, vector<2x8x128xf32>
    %5 = math.absf %3 : vector<2x8x128xf32>
    %cst = arith.constant 0.000000e+00 : f32
    %6 = vector.broadcast %cst : f32 to vector<2x8x128xf32>
    %7 = arith.subf %6, %5 : vector<2x8x128xf32>
    %8 = math.exp %7 : vector<2x8x128xf32>
    %cst_6 = arith.constant 1.000000e+00 : f32
    %9 = vector.broadcast %cst_6 : f32 to vector<2x8x128xf32>
    %10 = arith.addf %9, %8 : vector<2x8x128xf32>
    %cst_7 = arith.constant 0.000000e+00 : f32
    %11 = vector.broadcast %cst_7 : f32 to vector<2x8x128xf32>
    %12 = arith.maximumf %3, %11 : vector<2x8x128xf32>
    %13 = arith.mulf %3, %4 : vector<2x8x128xf32>
    %14 = arith.subf %12, %13 : vector<2x8x128xf32>
    %15 = math.log %10 : vector<2x8x128xf32>
    %16 = arith.addf %14, %15 : vector<2x8x128xf32>
    %17 = tpu.reciprocal %10 {approx = true} : vector<2x8x128xf32> -> vector<2x8x128xf32>
    %cst_8 = arith.constant 0.000000e+00 : f32
    %18 = vector.broadcast %cst_8 : f32 to vector<2x8x128xf32>
    %19 = arith.cmpf oge, %3, %18 : vector<2x8x128xf32>
    %20 = arith.mulf %8, %17 : vector<2x8x128xf32>
    %21 = arith.select %19, %17, %20 : vector<2x8x128xi1>, vector<2x8x128xf32>
    %22 = arith.mulf %21, %4 : vector<2x8x128xf32>
    %c0_9 = arith.constant 0 : index
    %c0_10 = arith.constant 0 : index
    %c0_11 = arith.constant 0 : index
    %c0_12 = arith.constant 0 : index
    %23 = vector.load %arg4[%c0_9, %c0_10, %c0_11, %c0_12] : memref<1x2x8x128xf32, #tpu.memory_space<vmem>>, vector<1x2x8x128xf32>
    %24 = vector.shape_cast %16 : vector<2x8x128xf32> to vector<2x1x8x128xf32>
    %cst_13 = arith.constant dense<0.000000e+00> : vector<2x8x128xf32>
    %25 = vector.multi_reduction <add>, %24, %cst_13 [1] : vector<2x1x8x128xf32> to vector<2x8x128xf32>
    %26 = vector.shape_cast %25 : vector<2x8x128xf32> to vector<1x2x8x128xf32>
    %27 = arith.addf %23, %26 : vector<1x2x8x128xf32>
    %c0_14 = arith.constant 0 : index
    %c0_15 = arith.constant 0 : index
    %c0_16 = arith.constant 0 : index
    %c0_17 = arith.constant 0 : index
    %28 = vector.load %arg4[%c0_14, %c0_15, %c0_16, %c0_17] : memref<1x2x8x128xf32, #tpu.memory_space<vmem>>, vector<1x2x8x128xf32>
    tpu.vector_store %arg4[%c0_14, %c0_15, %c0_16, %c0_17], %27 {strides = array<i32>} : memref<1x2x8x128xf32, #tpu.memory_space<vmem>>, vector<1x2x8x128xf32>,
    %c0_18 = arith.constant 0 : index
    %c0_19 = arith.constant 0 : index
    %c0_20 = arith.constant 0 : index
    %c0_21 = arith.constant 0 : index
    %29 = vector.load %arg5[%c0_18, %c0_19, %c0_20, %c0_21] : memref<1x2x8x128xf32, #tpu.memory_space<vmem>>, vector<1x2x8x128xf32>
    %30 = vector.shape_cast %22 : vector<2x8x128xf32> to vector<2x1x8x128xf32>
    %cst_22 = arith.constant dense<0.000000e+00> : vector<2x8x128xf32>
    %31 = vector.multi_reduction <add>, %30, %cst_22 [1] : vector<2x1x8x128xf32> to vector<2x8x128xf32>
    %32 = vector.shape_cast %31 : vector<2x8x128xf32> to vector<1x2x8x128xf32>
    %33 = arith.addf %29, %32 : vector<1x2x8x128xf32>
    %c0_23 = arith.constant 0 : index
    %c0_24 = arith.constant 0 : index
    %c0_25 = arith.constant 0 : index
    %c0_26 = arith.constant 0 : index
    %34 = vector.load %arg5[%c0_23, %c0_24, %c0_25, %c0_26] : memref<1x2x8x128xf32, #tpu.memory_space<vmem>>, vector<1x2x8x128xf32>
    tpu.vector_store %arg5[%c0_23, %c0_24, %c0_25, %c0_26], %33 {strides = array<i32>} : memref<1x2x8x128xf32, #tpu.memory_space<vmem>>, vector<1x2x8x128xf32>,
    %c0_27 = arith.constant 0 : index
    %c0_28 = arith.constant 0 : index
    %c0_29 = arith.constant 0 : index
    %c0_30 = arith.constant 0 : index
    %35 = vector.load %arg6[%c0_27, %c0_28, %c0_29, %c0_30] : memref<1x2x8x128xf32, #tpu.memory_space<vmem>>, vector<1x2x8x128xf32>
    %36 = vector.shape_cast %21 : vector<2x8x128xf32> to vector<2x1x8x128xf32>
    %cst_31 = arith.constant dense<0.000000e+00> : vector<2x8x128xf32>
    %37 = vector.multi_reduction <add>, %36, %cst_31 [1] : vector<2x1x8x128xf32> to vector<2x8x128xf32>
    %38 = vector.shape_cast %37 : vector<2x8x128xf32> to vector<1x2x8x128xf32>
    %39 = arith.addf %35, %38 : vector<1x2x8x128xf32>
    %c0_32 = arith.constant 0 : index
    %c0_33 = arith.constant 0 : index
    %c0_34 = arith.constant 0 : index
    %c0_35 = arith.constant 0 : index
    %40 = vector.load %arg6[%c0_32, %c0_33, %c0_34, %c0_35] : memref<1x2x8x128xf32, #tpu.memory_space<vmem>>, vector<1x2x8x128xf32>
    tpu.vector_store %arg6[%c0_32, %c0_33, %c0_34, %c0_35], %39 {strides = array<i32>} : memref<1x2x8x128xf32, #tpu.memory_space<vmem>>, vector<1x2x8x128xf32>,
    %c0_36 = arith.constant 0 : index
    %c0_37 = arith.constant 0 : index
    %c0_38 = arith.constant 0 : index
    %c0_39 = arith.constant 0 : index
    %41 = vector.load %arg7[%c0_36, %c0_37, %c0_38, %c0_39] : memref<1x2x8x128xf32, #tpu.memory_space<vmem>>, vector<1x2x8x128xf32>
    %42 = vector.shape_cast %4 : vector<2x8x128xf32> to vector<2x1x8x128xf32>
    %cst_40 = arith.constant dense<0.000000e+00> : vector<2x8x128xf32>
    %43 = vector.multi_reduction <add>, %42, %cst_40 [1] : vector<2x1x8x128xf32> to vector<2x8x128xf32>
    %44 = vector.shape_cast %43 : vector<2x8x128xf32> to vector<1x2x8x128xf32>
    %45 = arith.addf %41, %44 : vector<1x2x8x128xf32>
    %c0_41 = arith.constant 0 : index
    %c0_42 = arith.constant 0 : index
    %c0_43 = arith.constant 0 : index
    %c0_44 = arith.constant 0 : index
    %46 = vector.load %arg7[%c0_41, %c0_42, %c0_43, %c0_44] : memref<1x2x8x128xf32, #tpu.memory_space<vmem>>, vector<1x2x8x128xf32>
    tpu.vector_store %arg7[%c0_41, %c0_42, %c0_43, %c0_44], %45 {strides = array<i32>} : memref<1x2x8x128xf32, #tpu.memory_space<vmem>>, vector<1x2x8x128xf32>,
    return
  }
  func.func @transform_0(%arg0: i32, %arg1: i32) -> (i32, i32, i32) {
    %c1_i32 = arith.constant 1 : i32
    %0 = arith.muli %arg0, %c1_i32 : i32
    %1 = arith.addi %0, %arg1 : i32
    %c0_i32 = arith.constant 0 : i32
    %c0_i32_0 = arith.constant 0 : i32
    %c0_i32_1 = arith.constant 0 : i32
    return %c0_i32, %1, %c0_i32_0 : i32, i32, i32
  }
  func.func @transform_1(%arg0: i32, %arg1: i32) -> (i32, i32, i32) {
    %c1_i32 = arith.constant 1 : i32
    %0 = arith.muli %arg0, %c1_i32 : i32
    %1 = arith.addi %0, %arg1 : i32
    %c0_i32 = arith.constant 0 : i32
    %c0_i32_0 = arith.constant 0 : i32
    %c0_i32_1 = arith.constant 0 : i32
    return %c0_i32, %1, %c0_i32_0 : i32, i32, i32
  }
  func.func @transform_2(%arg0: i32, %arg1: i32) -> (i32, i32, i32, i32) {
    %c0_i32 = arith.constant 0 : i32
    %c0_i32_0 = arith.constant 0 : i32
    %c0_i32_1 = arith.constant 0 : i32
    %c0_i32_2 = arith.constant 0 : i32
    return %arg0, %c0_i32, %c0_i32_0, %c0_i32_1 : i32, i32, i32, i32
  }
  func.func @transform_3(%arg0: i32, %arg1: i32) -> (i32, i32, i32, i32) {
    %c0_i32 = arith.constant 0 : i32
    %c0_i32_0 = arith.constant 0 : i32
    %c0_i32_1 = arith.constant 0 : i32
    %c0_i32_2 = arith.constant 0 : i32
    return %arg0, %c0_i32, %c0_i32_0, %c0_i32_1 : i32, i32, i32, i32
  }
  func.func @transform_4(%arg0: i32, %arg1: i32) -> (i32, i32, i32, i32) {
    %c0_i32 = arith.constant 0 : i32
    %c0_i32_0 = arith.constant 0 : i32
    %c0_i32_1 = arith.constant 0 : i32
    %c0_i32_2 = arith.constant 0 : i32
    return %arg0, %c0_i32, %c0_i32_0, %c0_i32_1 : i32, i32, i32, i32
  }
  func.func @transform_5(%arg0: i32, %arg1: i32) -> (i32, i32, i32, i32) {
    %c0_i32 = arith.constant 0 : i32
    %c0_i32_0 = arith.constant 0 : i32
    %c0_i32_1 = arith.constant 0 : i32
    %c0_i32_2 = arith.constant 0 : i32
    return %arg0, %c0_i32, %c0_i32_0, %c0_i32_1 : i32, i32, i32, i32
  }
}

</mosaic_0001>

<bundles_post_ra>
// kernel: bce_dice_loss.1
= control target key start
LH: loop header
LB: loop body
LE: loop exit
PB: predicated region body
PF: predicated region fallthrough
CT: control target
= control target key end

     0   :  { %s236_s0 = inlined_call_operand.vmem [shape: f32[2,8,128], index: 0, kind: input, shape index: {}]   ;;  %s237_s1 = inlined_call_operand.vmem [shape: f32[2,8,128], index: 1, kind: input, shape index: {}]   ;;  %s238_s5 = inlined_call_operand.vmem [shape: f32[1,2,8,128], index: 5, kind: output, shape index: {3}]   ;;  %s239_s2 = inlined_call_operand.vmem [shape: f32[1,2,8,128], index: 2, kind: output, shape index: {0}]   ;;  %s240_s4 = inlined_call_operand.vmem [shape: f32[1,2,8,128], index: 4, kind: output, shape index: {2}]   ;;  %s241_s3 = inlined_call_operand.vmem [shape: f32[1,2,8,128], index: 3, kind: output, shape index: {1}]  }
   0x1   :  { %v61_v0 = vld [vmem:[%s236_s0] sm:$0xff]  ;;  %v62_v1 = vld [vmem:[%s236_s0 + $0x8] sm:$0xff] }
   0x2   :  { %v65_v2 = vand.u32 2147483647, %v61_v0  ;;  %v66_v3 = vand.u32 2147483647, %v62_v1  ;;  %v63_v4 = vld [vmem:[%s237_s1] sm:$0xff]  ;;  %v64_v6 = vld [vmem:[%s237_s1 + $0x8] sm:$0xff] }
   0x3   :  { %127 = vst [vmem:[%s238_s5] sm:$0xff] %v63_v4  ;;  %128 = vst [vmem:[%s238_s5 + $0x8] sm:$0xff] %v64_v6  ;;  %v75_v14 = vmax.f32 %v61_v0, 0.0  ;;  %v77_v15 = vmul.f32 %v63_v4, %v61_v0  ;;  %v76_v16 = vmax.f32 %v62_v1, 0.0  ;;  %v78_v17 = vmul.f32 %v64_v6, %v62_v1 }
   0x4   :  { %v67_v5 = vsub.f32 0.0, %v65_v2  ;;  %v68_v7 = vsub.f32 0.0, %v66_v3  ;;  %vm89_vm0 = vcmp.ge.f32.partialorder %v61_v0, 0.0  ;;  %vm90_vm1 = vcmp.ge.f32.partialorder %v62_v1, 0.0 }
   0x5   :  { %v79_v18 = vsub.f32 %v75_v14, %v77_v15  ;;  %v80_v22 = vsub.f32 %v76_v16, %v78_v17 }
   0x6   :  { %v69_v8 = vmul.f32 1.442695, %v67_v5  ;;  %v71_v9 = vmul.f32 1.442695, %v68_v7 }
   0x8   :  { %158 = vpow2.f32 %v69_v8 }
   0x9   :  { %160 = vpow2.f32 %v71_v9 }
  0x12   :  { %v159_v10 = vpop.eup %158 }
  0x13   :  { %v161_v11 = vpop.eup %160  ;;  %v73_v12 = vadd.f32 1.0, %v159_v10 }
  0x14   :  { %v74_v13 = vadd.f32 1.0, %v161_v11 }
  0x15   :  { %162 = vlog2.f32 %v73_v12 }
  0x16   :  { %164 = vrcp.f32 %v73_v12 }
  0x17   :  { %166 = vlog2.f32 %v74_v13 }
  0x18   :  { %168 = vrcp.f32 %v74_v13 }
  0x1f   :  { %v163_v19 = vpop.eup %162 }
  0x20   :  { %v165_v20 = vpop.eup %164  ;;  %v82_v21 = vmul.f32 0.6931472, %v163_v19 }
  0x21   :  { %v167_v23 = vpop.eup %166  ;;  %v91_v24 = vmul.f32 %v165_v20, %v159_v10 }
  0x22   :  { %v169_v25 = vpop.eup %168  ;;  %v85_v26 = vadd.f32 %v82_v21, %v79_v18  ;;  %v84_v27 = vmul.f32 0.6931472, %v167_v23 }
  0x23   :  { %v93_v28 = vsel %vm89_vm0, %v165_v20, %v91_v24  ;;  %v92_v29 = vmul.f32 %v169_v25, %v161_v11 }
  0x24   :  { %v86_v30 = vadd.f32 %v84_v27, %v80_v22  ;;  %v95_v31 = vmul.f32 %v93_v28, %v63_v4  ;;  %103 = vst [vmem:[%s239_s2] sm:$0xff] %v85_v26  ;;  %119 = vst [vmem:[%s240_s4] sm:$0xff] %v93_v28 }
  0x25   :  { %v94_v32 = vsel %vm90_vm1, %v169_v25, %v92_v29 }
  0x26   :  { %v96_v33 = vmul.f32 %v94_v32, %v64_v6  ;;  %104 = vst [vmem:[%s239_s2 + $0x8] sm:$0xff] %v86_v30  ;;  %111 = vst [vmem:[%s241_s3] sm:$0xff] %v95_v31 }
  0x27   :  { %120 = vst [vmem:[%s240_s4 + $0x8] sm:$0xff] %v94_v32 }
  0x28   :  { %112 = vst [vmem:[%s241_s3 + $0x8] sm:$0xff] %v96_v33 }

</bundles_post_ra>
